<compile_context>
chip_gen: v6e
topology: v6e:2x2x1
jax: 0.10.0
libtpu: 0.0.40
codegen_flags: <defaults>
</compile_context>

<pallas_src>
import functools

import jax
import jax.numpy as jnp
from jax import lax
from jax.experimental import pallas as pl
from jax.experimental.pallas import tpu as pltpu


# ----------------------------------------------------------------------------
# Kernels
# ----------------------------------------------------------------------------
def _readout_kernel_single(seq_ref, q_ref, out_ref):
    """Whole-N softmax readout for one batch block.  grid = (nb,)."""
    s = seq_ref[...].astype(jnp.float32)                    # (TB, N, D)
    q = q_ref[...].astype(jnp.float32)                      # (TB, D)

    # sim[b, n] = <seq[b, n, :], query[b, :]>  (exact f32 on VPU + XLU reduce)
    sim = jnp.sum(s * q[:, None, :], axis=-1)               # (TB, N)

    m = jnp.max(sim, axis=-1, keepdims=True)                 # (TB, 1)
    p = jnp.exp(sim - m)                                      # (TB, N)
    l = jnp.sum(p, axis=-1, keepdims=True)                    # (TB, 1)

    pv = jnp.sum(p[:, :, None] * s, axis=1)                   # (TB, D)
    out_ref[...] = (pv / l).astype(out_ref.dtype)


def _readout_kernel_flash(seq_ref, q_ref, out_ref, m_sc, l_sc, acc_sc, *,
                          n_valid, tn):
    """Online-softmax readout over N tiles.  grid = (nb, nk), nk last."""
    k = pl.program_id(1)

    @pl.when(k == 0)
    def _init():
        m_sc[...] = jnp.full(m_sc.shape, -jnp.inf, dtype=m_sc.dtype)
        l_sc[...] = jnp.zeros(l_sc.shape, dtype=l_sc.dtype)
        acc_sc[...] = jnp.zeros(acc_sc.shape, dtype=acc_sc.dtype)

    s = seq_ref[...].astype(jnp.float32)                      # (TB, TN, D)
    q = q_ref[...].astype(jnp.float32)                        # (TB, D)

    sim = jnp.sum(s * q[:, None, :], axis=-1)                  # (TB, TN)

    if n_valid is not None:
        # Over-covered N tail (no wrapper padding): mask padded key columns.
        # `s` is zeroed too so 0 * <stale VMEM garbage> cannot produce NaN in
        # the weighted sum.  Tile k == 0 is always fully valid (tn < N), so the
        # running max is finite and alpha below never sees inf - inf.
        col = k * tn + lax.broadcasted_iota(jnp.int32, sim.shape, 1)
        valid = col < n_valid
        sim = jnp.where(valid, sim, -jnp.inf)
        s = jnp.where(valid[:, :, None], s, 0.0)

    m_prev = m_sc[...]                                         # (TB, 1)
    m_new = jnp.maximum(m_prev, jnp.max(sim, axis=-1, keepdims=True))
    alpha = jnp.exp(m_prev - m_new)                            # (TB, 1)
    p = jnp.exp(sim - m_new)                                   # (TB, TN)

    l_sc[...] = alpha * l_sc[...] + jnp.sum(p, axis=-1, keepdims=True)
    acc_sc[...] = alpha * acc_sc[...] + jnp.sum(p[:, :, None] * s, axis=1)
    m_sc[...] = m_new

    @pl.when(k == pl.num_programs(1) - 1)
    def _finalize():
        out_ref[...] = (acc_sc[...] / l_sc[...]).astype(out_ref.dtype)


# ----------------------------------------------------------------------------
# Wrapper
# ----------------------------------------------------------------------------
def _cdiv(a, b):
    return (a + b - 1) // b


def _round_up(x, m):
    return ((x + m - 1) // m) * m


_SEQ_BLOCK_BYTES = 8 << 20       # ~8 MiB (VMEM-padded) per seq block
_VMEM_CLAMP_BYTES = 48 << 20     # headroom vs v7x's 64 MiB per-TC VMEM


def wsreadout(seq, query, *, tb=None, tn=None, block_bytes=_SEQ_BLOCK_BYTES):
    """seq: (B, N, D), query: (B, 1, D) -> (B, D)."""
    B, N, D = seq.shape
    assert query.shape == (B, 1, D)
    q2 = query.reshape(B, D)                 # squeeze size-1 dim (free reshape)

    itemsize = jnp.dtype(seq.dtype).itemsize
    d_pad = _round_up(D, 128)                # lane padding in VMEM
    row_bytes = max(1, _round_up(N, 8) * d_pad * itemsize)   # one padded seq row

    # --- batch tile: multiple of 8 (or the full B); sized so each step moves
    #     multiple MiB when N is small; when B > 8 keep >= 2 batch blocks so
    #     the "parallel" axis spans both v7x TensorCores. -----------------------
    if tb is None:
        want = max(8, (block_bytes // row_bytes) // 8 * 8)
        if B <= 8:
            tb = B
        else:
            half = max(8, (((B + 1) // 2) // 8) * 8)
            tb = min(want, half)
    else:
        tb = B if tb >= B else max(8, (tb // 8) * 8)
    nb = _cdiv(B, tb)

    # --- N tile: full N (fast path) when it fits the block budget, otherwise a
    #     multiple-of-8 tile with grid over-cover (no jnp.pad of seq). ----------
    if tn is None:
        if tb * row_bytes <= block_bytes or N <= 8:
            tn = N
        else:
            tn = max(128, (block_bytes // (tb * d_pad * itemsize)) // 128 * 128)
            tn = min(tn, _round_up(N, 8))
    else:
        tn = min(_round_up(max(tn, 8), 8), _round_up(N, 8))
    if tn >= N:
        tn = N
    single = tn == N
    nk = _cdiv(N, tn)
    n_valid = None if N % tn == 0 else N

    # --- VMEM sizing: double-buffered blocks + f32 temporaries + headroom ------
    tn_pad = _round_up(tn, 8)
    blk_io = tb * tn_pad * d_pad * itemsize        # one seq block (VMEM-padded)
    blk_f32 = tb * tn_pad * d_pad * 4              # full-size f32 temporaries
    small = tb * d_pad * 4                         # query / out / scratch rows
    need = 2 * blk_io + 4 * small                  # seq + query + out (x2 bufs)
    need += 3 * blk_f32 + 4 * small                # in-kernel temps + scratch
    vmem_limit = int(min(max(need + (4 << 20), 16 << 20), _VMEM_CLAMP_BYTES))

    out_shape = jax.ShapeDtypeStruct((B, D), seq.dtype)

    if single:
        kernel = _readout_kernel_single
        grid_spec = pltpu.PrefetchScalarGridSpec(
            num_scalar_prefetch=0,
            grid=(nb,),
            in_specs=[
                pl.BlockSpec((tb, N, D), lambda b: (b, 0, 0)),
                pl.BlockSpec((tb, D), lambda b: (b, 0)),
            ],
            out_specs=pl.BlockSpec((tb, D), lambda b: (b, 0)),
        )
        dims = ("parallel",)
    else:
        kernel = functools.partial(_readout_kernel_flash, n_valid=n_valid, tn=tn)
        grid_spec = pltpu.PrefetchScalarGridSpec(
            num_scalar_prefetch=0,
            grid=(nb, nk),
            in_specs=[
                pl.BlockSpec((tb, tn, D), lambda b, k: (b, k, 0)),
                pl.BlockSpec((tb, D), lambda b, k: (b, 0)),
            ],
            out_specs=pl.BlockSpec((tb, D), lambda b, k: (b, 0)),
            scratch_shapes=[
                pltpu.VMEM((tb, 1), jnp.float32),   # running max
                pltpu.VMEM((tb, 1), jnp.float32),   # running denominator
                pltpu.VMEM((tb, D), jnp.float32),   # weighted-sum accumulator
            ],
        )
        dims = ("parallel", "arbitrary")

    return pl.pallas_call(
        kernel,
        out_shape=out_shape,
        grid_spec=grid_spec,
        compiler_params=pltpu.CompilerParams(
            dimension_semantics=dims,
            vmem_limit_bytes=vmem_limit,
        ),
    )(seq, q2)


def wsreadout_ref(seq, query):
    # Pure-JAX reference mirroring the PyTorch readout
    # (the .repeat(1,1,64) is just a broadcast of the softmax weights).
    sim = jnp.sum(seq * query, axis=-1, keepdims=True)        # (B, N, 1)
    sim = jax.nn.softmax(sim, axis=1)                         # softmax over N
    return jnp.sum(seq * sim, axis=1)                         # (B, D)


if __name__ == "__main__":
    B, N, D = 3, 40, 64
    key = jax.random.PRNGKey(0)
    k1, k2, k3, k4 = jax.random.split(key, 4)
    seq = jax.random.normal(k1, (B, N, D), dtype=jnp.float32)
    query = jax.random.normal(k2, (B, 1, D), dtype=jnp.float32)
    ref = wsreadout_ref(seq, query)

    # Default tiling: single-N-tile fast path, batch-blocked.
    out = jax.block_until_ready(wsreadout(seq, query))
    assert out.shape == (B, D)
    assert jnp.allclose(out, ref, atol=1e-4, rtol=1e-4), "mismatch (fast path)"

    # Forced small N tile: exercises the flash path, grid over-cover along N
    # (40 % 16 != 0) and the in-kernel column masking -- no wrapper padding.
    out2 = jax.block_until_ready(wsreadout(seq, query, tn=16))
    assert jnp.allclose(out2, ref, atol=1e-4, rtol=1e-4), "mismatch (flash path)"

    # Batch not a multiple of the batch tile: exercises batch-axis over-cover
    # (last block partially out of bounds, garbage rows never written back).
    B2 = 19
    seq2 = jax.random.normal(k3, (B2, N, D), dtype=jnp.float32)
    query2 = jax.random.normal(k4, (B2, 1, D), dtype=jnp.float32)
    ref2 = wsreadout_ref(seq2, query2)
    out3 = jax.block_until_ready(wsreadout(seq2, query2))
    assert out3.shape == (B2, D)
    assert jnp.allclose(out3, ref2, atol=1e-4, rtol=1e-4), "mismatch (batch tail)"

    print("KERNEL_OK")
</pallas_src>

<mosaic_0001>
module attributes {stable_mosaic.version = 11 : i64} {
  func.func @_readout_kernel_single(%arg0: i32, %arg1: memref<3x40x64xf32, #tpu.memory_space<vmem>>, %arg2: memref<3x64xf32, #tpu.memory_space<vmem>>, %arg3: memref<3x64xf32, #tpu.memory_space<vmem>>) attributes {dimension_semantics = [#tpu.dimension_semantics<parallel>], iteration_bounds = array<i64: 1>, scalar_prefetch = 0 : i64, scratch_operands = 0 : i64, tpu.core_type = #tpu.core_type<tc>, window_params = [{transform_indices = @transform_0, window_bounds = array<i64: 3, 40, 64>}, {transform_indices = @transform_1, window_bounds = array<i64: 3, 64>}, {transform_indices = @transform_2, window_bounds = array<i64: 3, 64>}]} {
    %c0 = arith.constant 0 : index
    %c0_0 = arith.constant 0 : index
    %c0_1 = arith.constant 0 : index
    %0 = vector.load %arg1[%c0, %c0_0, %c0_1] : memref<3x40x64xf32, #tpu.memory_space<vmem>>, vector<3x40x64xf32>
    %c0_2 = arith.constant 0 : index
    %c0_3 = arith.constant 0 : index
    %1 = vector.load %arg2[%c0_2, %c0_3] : memref<3x64xf32, #tpu.memory_space<vmem>>, vector<3x64xf32>
    %2 = vector.shape_cast %1 : vector<3x64xf32> to vector<3x1x64xf32>
    %3 = vector.broadcast %2 : vector<3x1x64xf32> to vector<3x40x64xf32>
    %4 = arith.mulf %0, %3 : vector<3x40x64xf32>
    %cst = arith.constant dense<0.000000e+00> : vector<3x40xf32>
    %5 = vector.multi_reduction <add>, %4, %cst [2] : vector<3x40x64xf32> to vector<3x40xf32>
    %cst_4 = arith.constant dense<0xFF800000> : vector<3xf32>
    %6 = vector.multi_reduction <maximumf>, %5, %cst_4 [1] : vector<3x40xf32> to vector<3xf32>
    %7 = vector.shape_cast %6 : vector<3xf32> to vector<3x1xf32>
    %8 = vector.broadcast %7 : vector<3x1xf32> to vector<3x40xf32>
    %9 = arith.subf %5, %8 : vector<3x40xf32>
    %10 = math.exp %9 : vector<3x40xf32>
    %cst_5 = arith.constant dense<0.000000e+00> : vector<3xf32>
    %11 = vector.multi_reduction <add>, %10, %cst_5 [1] : vector<3x40xf32> to vector<3xf32>
    %12 = vector.shape_cast %11 : vector<3xf32> to vector<3x1xf32>
    %13 = vector.shape_cast %10 : vector<3x40xf32> to vector<3x40x1xf32>
    %14 = vector.broadcast %13 : vector<3x40x1xf32> to vector<3x40x64xf32>
    %15 = arith.mulf %14, %0 : vector<3x40x64xf32>
    %cst_6 = arith.constant dense<0.000000e+00> : vector<3x64xf32>
    %16 = vector.multi_reduction <add>, %15, %cst_6 [1] : vector<3x40x64xf32> to vector<3x64xf32>
    %17 = vector.broadcast %12 : vector<3x1xf32> to vector<3x64xf32>
    %18 = arith.divf %16, %17 : vector<3x64xf32>
    %c0_7 = arith.constant 0 : index
    %c0_8 = arith.constant 0 : index
    %19 = vector.load %arg3[%c0_7, %c0_8] : memref<3x64xf32, #tpu.memory_space<vmem>>, vector<3x64xf32>
    tpu.vector_store %arg3[%c0_7, %c0_8], %18 {strides = array<i32>} : memref<3x64xf32, #tpu.memory_space<vmem>>, vector<3x64xf32>,
    return
  }
  func.func @transform_0(%arg0: i32) -> (i32, i32, i32) {
    %c0_i32 = arith.constant 0 : i32
    %c0_i32_0 = arith.constant 0 : i32
    %c0_i32_1 = arith.constant 0 : i32
    return %arg0, %c0_i32, %c0_i32_0 : i32, i32, i32
  }
  func.func @transform_1(%arg0: i32) -> (i32, i32) {
    %c0_i32 = arith.constant 0 : i32
    %c0_i32_0 = arith.constant 0 : i32
    return %arg0, %c0_i32 : i32, i32
  }
  func.func @transform_2(%arg0: i32) -> (i32, i32) {
    %c0_i32 = arith.constant 0 : i32
    %c0_i32_0 = arith.constant 0 : i32
    return %arg0, %c0_i32 : i32, i32
  }
}

</mosaic_0001>

<bundles_post_ra>
// kernel: tpu_custom_call.1
= control target key start
LH: loop header
LB: loop body
LE: loop exit
PB: predicated region body
PF: predicated region fallthrough
CT: control target
= control target key end

     0   :  { %7 = vsyncpa [#allocation3], 0  ;;  %s953_s0 = inlined_call_operand.hbm [shape: f32[3,40,64], index: 0, kind: input, shape index: {}]   ;;  %s954_s1 = inlined_call_operand.hbm [shape: f32[3,64], index: 1, kind: input, shape index: {}]   ;;  %s955_s2 = inlined_call_operand.hbm [shape: f32[3,64], index: 2, kind: output, shape index: {}]  }
   0x1   :  { %8 = vsyncpa [#allocation6], 0 }
   0x2   :  { %9 = vsyncpa [#allocation4], 0  ;;  %s684_s9 = smov [#allocation2]  }
   0x3   :  { %s15_s10 = sshll.u32 %s684_s9, 4  ;;  %s16_s10 = int_to_ptr.vmem [resolvable:$true] %s15_s10 }
   0x4   :  { %s626_s11 = scalar_lea.vmem %s16_s10, 1920  ;;  %p631_p1 = scmp.lt.s32.totalorder %s16_s10, %s16_s10 }
   0x5   :  { %p627_p0 = scmp.ne.s32.totalorder %s16_s10, %s626_s11  ;;  %p632_p2 = scmp.lt.s32.totalorder %s626_s11, %s626_s11 }
   0x7   :  { %p633_p3 = por %p632_p2, %p631_p1 }
   0x9   :  { %p634_p4 = pnand %p633_p3, %p627_p0 }
   0xb   :  { %637 = shalt.err (!%p634_p4)
}
   0xc   :  { %s685_s12 = smov 128   ;;  %s686_s13 = smov 8  }
   0xd   :  { %21 = dma.hbm_to_vmem [thread:$0]  %s953_s0, 1920, %s16_s10, [#allocation3], %s685_s12, %s685_s12, %s686_s13  }
   0xe   :  { %s687_s16 = smov [#allocation5]  }
   0xf   :  { %s28_s17 = sshll.u32 %s687_s16, 4  ;;  %s29_s17 = int_to_ptr.vmem [resolvable:$true] %s28_s17 }
  0x10   :  { %s646_s18 = scalar_lea.vmem %s29_s17, 64  ;;  %p651_p6 = scmp.lt.s32.totalorder %s29_s17, %s29_s17 }
  0x11   :  { %p647_p5 = scmp.ne.s32.totalorder %s29_s17, %s646_s18  ;;  %p652_p7 = scmp.lt.s32.totalorder %s646_s18, %s646_s18 }
  0x13   :  { %p653_p8 = por %p652_p7, %p651_p6 }
  0x15   :  { %p654_p9 = pnand %p653_p8, %p647_p5 }
  0x17   :  { %657 = shalt.err (!%p654_p9)
}
  0x18   :  { %31 = dma.hbm_to_vmem [thread:$0]  %s954_s1, 64, %s29_s17, [#allocation6]  }
  0x19   :  { %678 = dma.done.wait [#allocation3], 1920  }
  0x1a   :  { %679 = vsyncadd [#allocation3], 4294965376 }
  0x1b   :  { %680 = dma.done.wait [#allocation6], 64  }
  0x1c   :  { %681 = vsyncadd [#allocation6], 4294967232  ;;  %v66_v0 = vlaneseq  ;;  %v688_v1 = vmov 1966171168   ;;  %v724_v12 = vld [vmem:[#allocation2] sm:$0xff]  ;;  %v726_v13 = vld [vmem:[#allocation2 + $0x8] sm:$0xff] }
  0x1d   :  { %v64_v2 = vunpack.c.l.s4 %v688_v1  ;;  %v572_v9 = vld.sshfl [vmem:[#allocation5] sm:$0x13 pattern:$0x75316420]  ;;  %vm108_vm0 = vcmask 523264   ;;  %v729_v16 = vld [vmem:[#allocation2 + $0x28] sm:$0xff] }
  0x1e   :  { %v712_v3 = vshrl.u32 %v66_v0, 7  ;;  %v714_v4 = vand.u32 127, %v66_v0  ;;  %v62_v11 = vcombine.high %v572_v9, %v572_v9  ;;  %v731_v17 = vld [vmem:[#allocation2 + $0x30] sm:$0xff]  ;;  %v741_v26 = vld [vmem:[#allocation2 + $0x38] sm:$0xff]  ;;  %v759_v40 = vld [vmem:[#allocation2 + $0x40] sm:$0xff]  ;;  %vm180_vm1 = vcmask 130112  }
  0x1f   :  { %v65_v5 = vunpack.c.0.s8 %v64_v2  ;;  %v736_v21 = vld [vmem:[#allocation2 + $0x10] sm:$0xff]  ;;  %v746_v30 = vld [vmem:[#allocation2 + $0x18] sm:$0xff]  ;;  %v763_v43 = vld [vmem:[#allocation2 + $0x60] sm:$0xff]  ;;  %vm187_vm2 = vcmask 195712   ;;  %vm194_vm3 = vcmask 261312   ;;  %vm201_vm4 = vcmask 326912  }
  0x20   :  { %v718_v6 = vsub.s32 %v714_v4, %v712_v3  ;;  %v722_v8 = vsub.s32 0, %v712_v3  ;;  %v751_v34 = vld [vmem:[#allocation2 + $0x58] sm:$0xff]  ;;  %v755_v37 = vld [vmem:[#allocation2 + $0x50] sm:$0xff]  ;;  %v175_v44 = vadd.s32 4294967288, %v714_v4  ;;  %v768_v47 = vld [vmem:[#allocation2 + $0x20] sm:$0xff]  ;;  %v182_v52 = vadd.s32 4294967280, %v714_v4 }
  0x21   :  { %v68_v7 = vsub.s32 %v65_v5, %v712_v3  ;;  %v775_v51 = vld [vmem:[#allocation2 + $0x48] sm:$0xff]  ;;  %v787_v59 = vld [vmem:[#allocation2 + $0x70] sm:$0xff]  ;;  %v189_v60 = vadd.s32 4294967272, %v714_v4  ;;  %vm251_vm5 = vcmask 1041409   ;;  %vm253_vm6 = vcmask 1042434   ;;  %s690_s0 = smov [#allocation7]  }
  0x22   :  { %v771_v48 = vsub.s32 %v175_v44, %v712_v3  ;;  %v780_v55 = vld [vmem:[#allocation2 + $0x68] sm:$0xff]  ;;  %v783_v56 = vsub.s32 %v182_v52, %v712_v3  ;;  %vm256_vm7 = vcmask 321536   ;;  %s562_s1 = sshll.u32 %s690_s0, 4  ;;  %vm554_vm8 = vcmask 518144   ;;  %s563_s1 = int_to_ptr.vmem [resolvable:$true] %s562_s1 }
  0x23   :  { %v69_v10 = vrot.slane %v572_v9, %v68_v7  ;;  %v76_v15 = vrot.slane %v62_v11, %v68_v7  ;;  %v793_v63 = vsub.s32 %v189_v60, %v712_v3  ;;  %v196_v7 = vadd.s32 4294967264, %v714_v4  ;;  %s658_s21 = scalar_lea.vmem %s563_s1, 64  ;;  %p663_p11 = scmp.lt.s32.totalorder %s563_s1, %s563_s1 }
  0x24   :  { %p659_p10 = scmp.ne.s32.totalorder %s563_s1, %s658_s21  ;;  %p664_p12 = scmp.lt.s32.totalorder %s658_s21, %s658_s21 }
  0x25   :  { %v81_v14 = vrot.slane %v69_v10, %v722_v8  ;;  %v85_v19 = vrot.slane %v76_v15, %v722_v8  ;;  %v77_v25 = vcombine.high %v69_v10, %v69_v10  ;;  %v801_v9 = vsub.s32 %v196_v7, %v712_v3 }
  0x26   :  { %p665_p13 = por %p664_p12, %p663_p11 }
  0x27   :  { %v93_v18 = vmul.f32 %v81_v14, %v724_v12  ;;  %v94_v20 = vmul.f32 %v81_v14, %v726_v13  ;;  %v98_v23 = vmul.f32 %v85_v19, %v729_v16  ;;  %v99_v24 = vmul.f32 %v85_v19, %v731_v17 }
  0x28   :  { %v95_v29 = vmul.f32 %v81_v14, %v736_v21  ;;  %v100_v32 = vmul.f32 %v85_v19, %v741_v26  ;;  %v89_v33 = vrot.slane %v77_v25, %v722_v8  ;;  %v96_v36 = vmul.f32 %v81_v14, %v746_v30  ;;  %p666_p0 = pnand %p665_p13, %p659_p10 }
  0x29   :  { %v109_v22 = vsel %vm108_vm0, %v93_v18, 0.0  ;;  %v124_v27 = vsel %vm108_vm0, %v98_v23, 0.0  ;;  %v112_v28 = vsel %vm108_vm0, %v94_v20, 0.0  ;;  %v127_v31 = vsel %vm108_vm0, %v99_v24, 0.0 }
  0x2a   :  { %110 = vadd.xlane.f32.xlu0 %v109_v22  ;;  %125 = vadd.xlane.f32.xlu1 %v124_v27  ;;  %v115_v35 = vsel %vm108_vm0, %v95_v29, 0.0  ;;  %v130_v38 = vsel %vm108_vm0, %v100_v32, 0.0  ;;  %v104_v39 = vmul.f32 %v89_v33, %v751_v34  ;;  %v118_v41 = vsel %vm108_vm0, %v96_v36, 0.0 }
  0x2b   :  { %v103_v42 = vmul.f32 %v89_v33, %v755_v37  ;;  %v101_v46 = vmul.f32 %v85_v19, %v759_v40  ;;  %v105_v50 = vmul.f32 %v89_v33, %v763_v43  ;;  %v97_v54 = vmul.f32 %v81_v14, %v768_v47 }
  0x2c   :  { %v142_v45 = vsel %vm108_vm0, %v104_v39, 0.0  ;;  %v102_v58 = vmul.f32 %v85_v19, %v775_v51  ;;  %v106_v62 = vmul.f32 %v89_v33, %v780_v55  ;;  %v107_v1 = vmul.f32 %v89_v33, %v787_v59 }
  0x2d   :  { %v139_v49 = vsel %vm108_vm0, %v103_v42, 0.0  ;;  %v133_v53 = vsel %vm108_vm0, %v101_v46, 0.0  ;;  %v145_v57 = vsel %vm108_vm0, %v105_v50, 0.0  ;;  %v121_v61 = vsel %vm108_vm0, %v97_v54, 0.0 }
  0x2e   :  { %113 = vadd.xlane.f32.xlu0 %v112_v28  ;;  %128 = vadd.xlane.f32.xlu1 %v127_v31  ;;  %v136_v0 = vsel %vm108_vm0, %v102_v58, 0.0  ;;  %v148_v2 = vsel %vm108_vm0, %v106_v62, 0.0  ;;  %v151_v5 = vsel %vm108_vm0, %v107_v1, 0.0 }
  0x32   :  { %116 = vadd.xlane.f32.xlu0 %v115_v35  ;;  %131 = vadd.xlane.f32.xlu1 %v130_v38 }
  0x36   :  { %119 = vadd.xlane.f32.xlu0 %v118_v41  ;;  %143 = vadd.xlane.f32.xlu1 %v142_v45 }
  0x3a   :  { %140 = vadd.xlane.f32.xlu0 %v139_v49  ;;  %134 = vadd.xlane.f32.xlu1 %v133_v53 }
  0x3e   :  { %146 = vadd.xlane.f32.xlu0 %v145_v57  ;;  %122 = vadd.xlane.f32.xlu1 %v121_v61 }
  0x42   :  { %137 = vadd.xlane.f32.xlu0 %v136_v0  ;;  %149 = vadd.xlane.f32.xlu1 %v148_v2 }
  0x46   :  { %152 = vadd.xlane.f32.xlu0 %v151_v5 }
  0xb3   :  { %v803_v10 = vpop.xlane.xlu0 %110  ;;  %v805_v11 = vpop.xlane.xlu1 %125 }
  0xb4   :  { %v206_v27 = vrot.slane %v805_v11, %v718_v6  ;;  %v174_v41 = vrot.slane %v803_v10, %v718_v6 }
  0xb7   :  { %v114_v14 = vpop.xlane.xlu0 %113  ;;  %v807_v15 = vpop.xlane.xlu1 %128 }
  0xb8   :  { %v210_v25 = vrot.slane %v807_v15, %v771_v48  ;;  %v179_v31 = vrot.slane %v114_v14, %v771_v48 }
  0xba   :  { %v211_v42 = vsel %vm180_vm1, %v210_v25, %v206_v27  ;;  %v181_v52 = vsel %vm180_vm1, %v179_v31, %v174_v41  ;;  %v689_v31 = vmov 0  }
  0xbb   :  { %v809_v18 = vpop.xlane.xlu0 %116  ;;  %v811_v19 = vpop.xlane.xlu1 %131  ;;  %581 = vset.pattern.permute.xlu1 %v689_v31  ;;  %580 = vset.pattern.permute.xlu0 %v689_v31 }
  0xbc   :  { %v215_v28 = vrot.slane %v811_v19, %v783_v56  ;;  %v186_v36 = vrot.slane %v809_v18, %v783_v56 }
  0xbe   :  { %v216_v46 = vsel %vm187_vm2, %v215_v28, %v211_v42  ;;  %v188_v58 = vsel %vm187_vm2, %v186_v36, %v181_v52 }
  0xbf   :  { %v813_v20 = vpop.xlane.xlu0 %119  ;;  %v815_v22 = vpop.xlane.xlu1 %143 }
  0xc0   :  { %v234_v32 = vrot.slane %v815_v22, %v771_v48  ;;  %v193_v44 = vrot.slane %v813_v20, %v793_v63 }
  0xc2   :  { %v195_v0 = vsel %vm194_vm3, %v193_v44, %v188_v58 }
  0xc3   :  { %v817_v23 = vpop.xlane.xlu0 %140  ;;  %v819_v4 = vpop.xlane.xlu1 %134 }
  0xc4   :  { %v230_v33 = vrot.slane %v817_v23, %v718_v6  ;;  %v220_v35 = vrot.slane %v819_v4, %v793_v63 }
  0xc6   :  { %v235_v53 = vsel %vm180_vm1, %v234_v32, %v230_v33  ;;  %v221_v54 = vsel %vm194_vm3, %v220_v35, %v216_v46  ;;  %v267_v32 = vsub.s32 1, %v712_v3  ;;  %v271_v46 = vsub.s32 2, %v712_v3 }
  0xc7   :  { %v821_v24 = vpop.xlane.xlu0 %146  ;;  %v829_v29 = vpop.xlane.xlu1 %122 }
  0xc8   :  { %v239_v38 = vrot.slane %v821_v24, %v783_v56  ;;  %v200_v49 = vrot.slane %v829_v29, %v801_v9 }
  0xca   :  { %v240_v60 = vsel %vm187_vm2, %v239_v38, %v235_v53  ;;  %v202_v5 = vsel %vm201_vm4, %v200_v49, %v195_v0 }
  0xcb   :  { %v842_v39 = vpop.xlane.xlu0 %137  ;;  %v150_v50 = vpop.xlane.xlu1 %149 }
  0xcc   :  { %v225_v45 = vrot.slane %v842_v39, %v801_v9  ;;  %v244_v57 = vrot.slane %v150_v50, %v793_v63 }
  0xce   :  { %v226_v62 = vsel %vm201_vm4, %v225_v45, %v221_v54  ;;  %v245_v2 = vsel %vm194_vm3, %v244_v57, %v240_v60 }
  0xcf   :  { %v860_v61 = vpop.xlane.xlu0 %152  ;;  %v252_v25 = vsel %vm251_vm5, %v226_v62, %v202_v5 }
  0xd0   :  { %v249_v1 = vrot.slane %v860_v61, %v801_v9 }
  0xd2   :  { %v250_v7 = vsel %vm201_vm4, %v249_v1, %v245_v2 }
  0xd3   :  { %v254_v27 = vsel %vm253_vm6, %v250_v7, %v252_v25 }
  0xd4   :  { %v257_v28 = vsel %vm256_vm7, %v254_v27, -inf }
  0xd5   :  { %258 = vmax.xlane.f32.xlu1 %v257_v28 }
 0x15e   :  { %v259_v33 = vpop.xlane.xlu1 %258 }
 0x15f   :  { %v264_v35 = vrot.slane %v259_v33, %v722_v8  ;;  %v268_v36 = vrot.slane %v259_v33, %v267_v32  ;;  %v272_v54 = vrot.slane %v259_v33, %v271_v46 }
 0x161   :  { %v276_v38 = vsub.f32 %v803_v10, %v264_v35  ;;  %v277_v41 = vsub.f32 %v114_v14, %v264_v35  ;;  %v281_v42 = vsub.f32 %v805_v11, %v268_v36  ;;  %v284_v49 = vsub.f32 %v819_v4, %v268_v36 }
 0x162   :  { %v282_v52 = vsub.f32 %v807_v15, %v268_v36  ;;  %v280_v8 = vsub.f32 %v829_v29, %v264_v35  ;;  %v278_v10 = vsub.f32 %v809_v18, %v264_v35  ;;  %v289_v11 = vsub.f32 %v150_v50, %v272_v54 }
 0x163   :  { %v291_v44 = vmul.f32 1.442695, %v276_v38  ;;  %v293_v45 = vmul.f32 1.442695, %v277_v41  ;;  %v301_v53 = vmul.f32 1.442695, %v281_v42  ;;  %v283_v3 = vsub.f32 %v811_v19, %v268_v36 }
 0x164   :  { %v307_v57 = vmul.f32 1.442695, %v284_v49  ;;  %v303_v14 = vmul.f32 1.442695, %v282_v52  ;;  %v299_v58 = vmul.f32 1.442695, %v280_v8  ;;  %v286_v62 = vsub.f32 %v817_v23, %v272_v54 }
 0x165   :  { %582 = vpow2.f32 %v291_v44  ;;  %v295_v60 = vmul.f32 1.442695, %v278_v10  ;;  %v317_v4 = vmul.f32 1.442695, %v289_v11  ;;  %v305_v0 = vmul.f32 1.442695, %v283_v3 }
 0x166   :  { %584 = vpow2.f32 %v293_v45  ;;  %v287_v18 = vsub.f32 %v815_v22, %v272_v54  ;;  %v311_v50 = vmul.f32 1.442695, %v286_v62  ;;  %v279_v2 = vsub.f32 %v813_v20, %v264_v35 }
 0x167   :  { %586 = vpow2.f32 %v301_v53  ;;  %v288_v25 = vsub.f32 %v821_v24, %v272_v54  ;;  %v285_v31 = vsub.f32 %v842_v39, %v268_v36  ;;  %v290_v20 = vsub.f32 %v860_v61, %v272_v54 }
 0x168   :  { %588 = vpow2.f32 %v307_v57  ;;  %v313_v5 = vmul.f32 1.442695, %v287_v18  ;;  %v297_v27 = vmul.f32 1.442695, %v279_v2 }
 0x169   :  { %590 = vpow2.f32 %v303_v14  ;;  %v315_v32 = vmul.f32 1.442695, %v288_v25  ;;  %v309_v35 = vmul.f32 1.442695, %v285_v31  ;;  %v319_v24 = vmul.f32 1.442695, %v290_v20 }
 0x16a   :  { %592 = vpow2.f32 %v299_v58 }
 0x16b   :  { %594 = vpow2.f32 %v295_v60 }
 0x16c   :  { %596 = vpow2.f32 %v317_v4 }
 0x16d   :  { %598 = vpow2.f32 %v305_v0 }
 0x16e   :  { %600 = vpow2.f32 %v311_v50 }
 0x16f   :  { %602 = vpow2.f32 %v313_v5 }
 0x170   :  { %604 = vpow2.f32 %v297_v27 }
 0x171   :  { %606 = vpow2.f32 %v315_v32 }
 0x172   :  { %v583_v15 = vpop.eup %582  ;;  %608 = vpow2.f32 %v309_v35 }
 0x173   :  { %v585_v29 = vpop.eup %584  ;;  %337 = vperm.xlu0 %580, %v583_v15   ;;  %610 = vpow2.f32 %v319_v24 }
 0x174   :  { %340 = vperm.xlu1 %581, %v585_v29   ;;  %v587_v1 = vpop.eup %586 }
 0x175   :  { %v589_v19 = vpop.eup %588 }
 0x176   :  { %v591_v7 = vpop.eup %590 }
 0x177   :  { %361 = vperm.xlu0 %580, %v589_v19   ;;  %v593_v23 = vpop.eup %592 }
 0x178   :  { %352 = vperm.xlu1 %581, %v587_v1   ;;  %v595_v28 = vpop.eup %594 }
 0x179   :  { %v597_v22 = vpop.eup %596 }
 0x17a   :  { %v599_v33 = vpop.eup %598 }
 0x17b   :  { %349 = vperm.xlu0 %580, %v593_v23   ;;  %v601_v38 = vpop.eup %600 }
 0x17c   :  { %355 = vperm.xlu1 %581, %v591_v7   ;;  %v603_v41 = vpop.eup %602 }
 0x17d   :  { %v605_v42 = vpop.eup %604 }
 0x17e   :  { %v607_v44 = vpop.eup %606 }
 0x17f   :  { %376 = vperm.xlu0 %580, %v597_v22   ;;  %v609_v39 = vpop.eup %608 }
 0x180   :  { %343 = vperm.xlu1 %581, %v595_v28   ;;  %v611_v36 = vpop.eup %610 }
 0x184   :  { %358 = vperm.xlu1 %581, %v599_v33  }
 0x188   :  { %367 = vperm.xlu1 %581, %v601_v38  }
 0x18c   :  { %370 = vperm.xlu1 %581, %v603_v41  }
 0x190   :  { %346 = vperm.xlu1 %581, %v605_v42  }
 0x194   :  { %373 = vperm.xlu1 %581, %v607_v44  }
 0x198   :  { %364 = vperm.xlu1 %581, %v609_v39  }
 0x19c   :  { %379 = vperm.xlu1 %581, %v611_v36  }
 0x1ee   :  { %v338_v45 = vpop.permute.xlu0 %337 }
 0x1ef   :  { %v341_v46 = vpop.permute.xlu1 %340  ;;  %v474_v61 = vmul.f32 %v338_v45, %v724_v12  ;;  %v384_v31 = vrot.slane %v338_v45, %v718_v6 }
 0x1f0   :  { %v475_v49 = vmul.f32 %v341_v46, %v726_v13 }
 0x1f1   :  { %v489_v52 = vsel %vm108_vm0, %v474_v61, 0.0 }
 0x1f2   :  { %v490_v53 = vsel %vm108_vm0, %v475_v49, 0.0  ;;  %v362_v13 = vpop.permute.xlu0 %361 }
 0x1f3   :  { %v491_v54 = vadd.f32 %v490_v53, %v489_v52  ;;  %v353_v8 = vpop.permute.xlu1 %352  ;;  %v482_v0 = vmul.f32 %v362_v13, %v759_v40  ;;  %v422_v52 = vrot.slane %v362_v13, %v793_v63 }
 0x1f4   :  { %v479_v57 = vmul.f32 %v353_v8, %v729_v16  ;;  %v408_v20 = vrot.slane %v353_v8, %v718_v6 }
 0x1f5   :  { %v509_v50 = vsel %vm108_vm0, %v482_v0, 0.0 }
 0x1f6   :  { %v504_v11 = vsel %vm108_vm0, %v479_v57, 0.0  ;;  %v350_v5 = vpop.permute.xlu0 %349 }
 0x1f7   :  { %v356_v10 = vpop.permute.xlu1 %355 }
 0x1f8   :  { %v480_v14 = vmul.f32 %v356_v10, %v731_v17  ;;  %v412_v28 = vrot.slane %v356_v10, %v771_v48 }
 0x1fa   :  { %v505_v58 = vsel %vm108_vm0, %v480_v14, 0.0  ;;  %v377_v38 = vpop.permute.xlu0 %376  ;;  %v413_v42 = vsel %vm180_vm1, %v412_v28, %v408_v20 }
 0x1fb   :  { %v506_v3 = vadd.f32 %v505_v58, %v504_v11  ;;  %v344_v60 = vpop.permute.xlu1 %343  ;;  %v403_v11 = vrot.slane %v350_v5, %v801_v9 }
 0x1fc   :  { %v476_v12 = vmul.f32 %v344_v60, %v736_v21 }
 0x1fe   :  { %v492_v4 = vsel %vm108_vm0, %v476_v12, 0.0 }
 0x1ff   :  { %v493_v15 = vadd.f32 %v492_v4, %v491_v54  ;;  %v359_v62 = vpop.permute.xlu1 %358 }
 0x200   :  { %v481_v16 = vmul.f32 %v359_v62, %v741_v26  ;;  %v478_v26 = vmul.f32 %v350_v5, %v768_v47 }
 0x202   :  { %v507_v29 = vsel %vm108_vm0, %v481_v16, 0.0  ;;  %v496_v35 = vsel %vm108_vm0, %v478_v26, 0.0 }
 0x203   :  { %v508_v17 = vadd.f32 %v507_v29, %v506_v3  ;;  %v368_v18 = vpop.permute.xlu1 %367 }
 0x204   :  { %v484_v19 = vmul.f32 %v368_v18, %v755_v37  ;;  %v388_v37 = vrot.slane %v341_v46, %v771_v48 }
 0x205   :  { %v510_v1 = vadd.f32 %v509_v50, %v508_v17 }
 0x206   :  { %v519_v7 = vsel %vm108_vm0, %v484_v19, 0.0  ;;  %v389_v45 = vsel %vm180_vm1, %v388_v37, %v384_v31 }
 0x207   :  { %v371_v2 = vpop.permute.xlu1 %370 }
 0x208   :  { %v485_v21 = vmul.f32 %v371_v2, %v751_v34  ;;  %v417_v34 = vrot.slane %v359_v62, %v783_v56  ;;  %v436_v24 = vrot.slane %v371_v2, %v771_v48  ;;  %v487_v48 = vmul.f32 %v377_v38, %v780_v55 }
 0x209   :  { %v446_v55 = vrot.slane %v377_v38, %v793_v63 }
 0x20a   :  { %v520_v23 = vsel %vm108_vm0, %v485_v21, 0.0  ;;  %v418_v46 = vsel %vm187_vm2, %v417_v34, %v413_v42 }
 0x20b   :  { %v521_v40 = vadd.f32 %v520_v23, %v519_v7  ;;  %v347_v25 = vpop.permute.xlu1 %346  ;;  %v423_v14 = vsel %vm194_vm3, %v422_v52, %v418_v46 }
 0x20c   :  { %v477_v27 = vmul.f32 %v347_v25, %v746_v30  ;;  %v393_v30 = vrot.slane %v344_v60, %v783_v56  ;;  %v398_v44 = vrot.slane %v347_v25, %v793_v63  ;;  %v524_v60 = vsel %vm108_vm0, %v487_v48, 0.0 }
 0x20e   :  { %v494_v22 = vsel %vm108_vm0, %v477_v27, 0.0 }
 0x20f   :  { %v495_v32 = vadd.f32 %v494_v22, %v493_v15  ;;  %v374_v33 = vpop.permute.xlu1 %373 }
 0x210   :  { %v486_v47 = vmul.f32 %v374_v33, %v763_v43  ;;  %v441_v39 = vrot.slane %v374_v33, %v783_v56  ;;  %v432_v43 = vrot.slane %v368_v18, %v718_v6  ;;  %v394_v56 = vsel %vm187_vm2, %v393_v30, %v389_v45 }
 0x211   :  { %v497_v41 = vadd.f32 %v496_v35, %v495_v32  ;;  %v399_v57 = vsel %vm194_vm3, %v398_v44, %v394_v56 }
 0x212   :  { %v522_v36 = vsel %vm108_vm0, %v486_v47, 0.0  ;;  %v437_v8 = vsel %vm180_vm1, %v436_v24, %v432_v43  ;;  %v404_v15 = vsel %vm201_vm4, %v403_v11, %v399_v57 }
 0x213   :  { %v523_v61 = vadd.f32 %v522_v36, %v521_v40  ;;  %v365_v49 = vpop.permute.xlu1 %364  ;;  %v442_v10 = vsel %vm187_vm2, %v441_v39, %v437_v8 }
 0x214   :  { %v427_v53 = vrot.slane %v365_v49, %v801_v9  ;;  %v483_v54 = vmul.f32 %v365_v49, %v775_v51  ;;  %v447_v62 = vsel %vm194_vm3, %v446_v55, %v442_v10 }
 0x215   :  { %v525_v4 = vadd.f32 %v524_v60, %v523_v61 }
 0x216   :  { %v511_v6 = vsel %vm108_vm0, %v483_v54, 0.0  ;;  %v428_v51 = vsel %vm201_vm4, %v427_v53, %v423_v14 }
 0x217   :  { %v512_v58 = vadd.f32 %v511_v6, %v510_v1  ;;  %v380_v3 = vpop.permute.xlu1 %379  ;;  %v453_v63 = vsel %vm251_vm5, %v428_v51, %v404_v15 }
 0x218   :  { %v451_v12 = vrot.slane %v380_v3, %v801_v9  ;;  %v488_v13 = vmul.f32 %v380_v3, %v787_v59  ;;  %v498_v59 = vrot.slane %v497_v41, 4 }
 0x219   :  { %v513_v9 = vrot.slane %v512_v58, 4 }
 0x21a   :  { %v526_v0 = vsel %vm108_vm0, %v488_v13, 0.0  ;;  %v452_v16 = vsel %vm201_vm4, %v451_v12, %v447_v62  ;;  %v499_v21 = vadd.f32 %v498_v59, %v497_v41 }
 0x21b   :  { %v527_v29 = vadd.f32 %v526_v0, %v525_v4  ;;  %v454_v17 = vsel %vm253_vm6, %v452_v16, %v453_v63  ;;  %v514_v1 = vadd.f32 %v513_v9, %v512_v58 }
 0x21c   :  { %v456_v18 = vsel %vm256_vm7, %v454_v17, 0.0  ;;  %v500_v25 = vrot.slane %v499_v21, 2 }
 0x21d   :  { %457 = vadd.xlane.f32.xlu0 %v456_v18  ;;  %v528_v50 = vrot.slane %v527_v29, 4  ;;  %v515_v23 = vrot.slane %v514_v1, 2 }
 0x21e   :  { %v501_v28 = vadd.f32 %v500_v25, %v499_v21 }
 0x21f   :  { %v529_v19 = vadd.f32 %v528_v50, %v527_v29  ;;  %v516_v26 = vadd.f32 %v515_v23, %v514_v1 }
 0x220   :  { %v502_v31 = vrot.slane %v501_v28, 1 }
 0x221   :  { %v530_v40 = vrot.slane %v529_v19, 2  ;;  %v517_v22 = vrot.slane %v516_v26, 1 }
 0x222   :  { %v503_v47 = vadd.f32 %v502_v31, %v501_v28 }
 0x223   :  { %v531_v27 = vadd.f32 %v530_v40, %v529_v19  ;;  %v518_v32 = vadd.f32 %v517_v22, %v516_v26 }
 0x225   :  { %v532_v37 = vrot.slane %v531_v27, 1 }
 0x227   :  { %v533_v20 = vadd.f32 %v532_v37, %v531_v27 }
 0x2a6   :  { %v458_v2 = vpop.xlane.xlu0 %457 }
 0x2a7   :  { %v535_v5 = vrot.slane %v458_v2, 1  ;;  %v536_v7 = vrot.slane %v458_v2, 2  ;;  %612 = vrcp.f32 %v458_v2 }
 0x2a9   :  { %614 = vrcp.f32 %v535_v5 }
 0x2aa   :  { %616 = vrcp.f32 %v536_v7 }
 0x2b4   :  { %v613_v34 = vpop.eup %612 }
 0x2b5   :  { %v541_v24 = vmul.f32 %v613_v34, %v503_v47 }
 0x2b6   :  { %v615_v33 = vpop.eup %614 }
 0x2b7   :  { %v617_v35 = vpop.eup %616  ;;  %v543_v30 = vmul.f32 %v615_v33, %v518_v32 }
 0x2b8   :  { %v545_v38 = vmul.f32 %v617_v35, %v533_v20 }
 0x2b9   :  { %v549_v41 = vrot.slane %v543_v30, 7 }
 0x2ba   :  { %v551_v42 = vrot.slane %v545_v38, 6 }
 0x2bb   :  { %v550_v44 = vsel %vm251_vm5, %v549_v41, %v541_v24 }
 0x2bc   :  { %v552_v39 = vsel %vm253_vm6, %v551_v42, %v550_v44 }
 0x2bd   :  { %555 = vst.msk [vmem:[#allocation7] sm:$0x7] %vm554_vm8, %v552_v39 }
 0x2be   :  { %669 = shalt.err (!%p666_p0)
}
 0x2bf   :  { %565 = dma.vmem_to_hbm [thread:$0]  %s563_s1, 64, %s955_s2, [#allocation4]  }
 0x2c0   :  { %682 = dma.done.wait [#allocation4], 64  }
 0x2c1   :  { %683 = vsyncadd [#allocation4], 4294967232 }
 0x2c2   :  { %569 = vsyncpa [#allocation3], 1 }
 0x2c3   :  { %570 = vsyncpa [#allocation6], 1 }
 0x2c4   :  { %571 = vsyncpa [#allocation4], 1 }

</bundles_post_ra>
